<compile_context>
chip_gen: v5e
topology: v5e:2x2
jax: 0.10.0
libtpu: 0.0.40
codegen_flags: <defaults>
</compile_context>

<pallas_src>
import numpy as np
import jax
import jax.numpy as jnp
from jax import lax
from jax.experimental import pallas as pl
from jax.experimental.pallas import tpu as pltpu


# contract dim 1 of lhs with dim 1 of rhs  (i.e.  lhs @ rhs.T  without transposing rhs)
_CONTRACT_K = (((1,), (1,)), ((), ()))
_HIGHEST = jax.lax.Precision.HIGHEST


def _dlinear_kernel(x_ref, d_ref, ws_ref, wt_ref, bs_ref, bt_ref, o_ref):
    """x:(1,K)  d:(K,K)  ws/wt:(N,K)  bs/bt:(1,N)  ->  o:(1,N)."""
    x = x_ref[...]
    # Moving-average decomposition as a matmul: trend[k] = sum_j D[k, j] * x[j].
    trend = lax.dot_general(x, d_ref[...], dimension_numbers=_CONTRACT_K,
                            precision=_HIGHEST, preferred_element_type=jnp.float32)
    seasonal = x - trend
    # y = seasonal @ Ws.T + trend @ Wt.T + bs + bt  (weights are (N, K), contract K).
    acc = lax.dot_general(seasonal, ws_ref[...], dimension_numbers=_CONTRACT_K,
                          precision=_HIGHEST, preferred_element_type=jnp.float32)
    acc = acc + lax.dot_general(trend, wt_ref[...], dimension_numbers=_CONTRACT_K,
                                precision=_HIGHEST, preferred_element_type=jnp.float32)
    o_ref[...] = (acc + bs_ref[...] + bt_ref[...]).astype(o_ref.dtype)


def _decomposition_matrix(batch, time, channels, kernel_size):
    """Constant (K, K) f32 matrix D with trend_flat = D @ x_flat.

    Exactly reproduces DecompositionLayer: replicate the first/last time step
    kernel_size//2 times on each side, AvgPool1d(kernel_size, stride=1) over time,
    drop the last window.  Built from static shapes with numpy, so it is a
    compile-time constant (no runtime transpose/pad ops in the wrapper)."""
    pads = kernel_size // 2
    padded_len = time + 2 * pads
    out_len = padded_len - kernel_size + 1 - 1          # AvgPool1d output, then [:-1]
    if out_len != time:
        raise ValueError(
            "DecompositionLayer requires an even kernel_size (= input_size); got "
            f"kernel_size={kernel_size}, time={time}")
    m = np.zeros((time, time), dtype=np.float64)
    for t in range(time):                               # window starts at padded index t
        for p in range(t, t + kernel_size):
            src = min(max(p - pads, 0), time - 1)       # padded index -> source row
            m[t, src] += 1.0
    m /= kernel_size
    # Flatten order of (B, T, C) is b*T*C + t*C + c  ->  D = I_B (x) M (x) I_C.
    d = np.kron(np.eye(batch), np.kron(m, np.eye(channels)))
    return jnp.asarray(d, dtype=jnp.float32)            # (K, K)


def dlinear_forward(context, w_seasonal, b_seasonal, w_trend, b_trend):
    """DLinearModel.forward.

    context:     (B, T, C) float32 with B*T*C == input_size
    w_seasonal:  (output_size, input_size)  -- nn.Linear layout, NOT transposed
    b_seasonal:  (output_size,)
    w_trend:     (output_size, input_size)
    b_trend:     (output_size,)
    returns      (1, 1, output_size), matching the PyTorch forward.
    """
    batch, time, channels = context.shape
    n, k = w_seasonal.shape
    if batch * time * channels != k:
        raise ValueError("context must flatten to input_size")

    d_mat = _decomposition_matrix(batch, time, channels, kernel_size=k)  # (K, K) const
    x_flat = context.reshape(1, k)         # row-major flatten == torch .reshape(1,1,-1)
    b_s = b_seasonal.reshape(1, n)
    b_t = b_trend.reshape(1, n)

    # Grid-less call: each operand is mapped whole into VMEM exactly once
    # (single-buffered; no grid-loop / scalar-prefetch bookkeeping).
    vmem = pl.BlockSpec(memory_space=pltpu.MemorySpace.VMEM)
    out = pl.pallas_call(
        _dlinear_kernel,
        out_shape=jax.ShapeDtypeStruct((1, n), jnp.float32),
        in_specs=[vmem] * 6,
        out_specs=vmem,
    )(x_flat, d_mat, w_seasonal, w_trend, b_s, b_t)
    # NOTE: for large real DLinear sizes, replace the (K,K) operator with a K-tiled
    # accumulator grid so the weights/D fit v7x's 64 MiB VMEM / v5e's scoped limit.
    return out.reshape(1, 1, n)


def _reference(context, w_seasonal, b_seasonal, w_trend, b_trend):
    """Literal JAX translation of the PyTorch forward (validation only)."""
    k = w_seasonal.shape[1]
    pads = k // 2
    front = jnp.repeat(context[:, :1, :], pads, axis=1)
    end = jnp.repeat(context[:, -1:, :], pads, axis=1)
    xp = jnp.concatenate([front, context, end], axis=1)          # (B, T + 2*pads, C)
    n_win = xp.shape[1] - k + 1
    trend = jnp.stack([xp[:, i:i + k, :].mean(axis=1) for i in range(n_win)],
                      axis=1)[:, :-1, :]                         # AvgPool1d then drop last
    seasonal = context - trend
    s_flat = seasonal.reshape(1, 1, -1)
    t_flat = trend.reshape(1, 1, -1)
    out = jnp.einsum("abk,nk->abn", s_flat, w_seasonal, precision=_HIGHEST) + b_seasonal
    out = out + jnp.einsum("abk,nk->abn", t_flat, w_trend, precision=_HIGHEST) + b_trend
    return out


if __name__ == "__main__":
    # Small shapes consistent with the module: context (B=1, T=8, C=16) flattens to
    # input_size = 128 (also the decomposition kernel_size); output_size = 32.
    batch, time, channels = 1, 8, 16
    input_size = batch * time * channels
    output_size = 32

    key = jax.random.PRNGKey(0)
    k_ctx, k_ws, k_bs, k_wt, k_bt = jax.random.split(key, 5)

    context = jax.random.normal(k_ctx, (batch, time, channels), dtype=jnp.float32)
    bound = 1.0 / float(np.sqrt(input_size))   # mimics nn.Linear's uniform init range
    w_seasonal = jax.random.uniform(k_ws, (output_size, input_size),
                                    minval=-bound, maxval=bound, dtype=jnp.float32)
    b_seasonal = jax.random.uniform(k_bs, (output_size,),
                                    minval=-bound, maxval=bound, dtype=jnp.float32)
    w_trend = jax.random.uniform(k_wt, (output_size, input_size),
                                 minval=-bound, maxval=bound, dtype=jnp.float32)
    b_trend = jax.random.uniform(k_bt, (output_size,),
                                 minval=-bound, maxval=bound, dtype=jnp.float32)

    y = dlinear_forward(context, w_seasonal, b_seasonal, w_trend, b_trend)
    y = jax.block_until_ready(y)

    y_ref = _reference(context, w_seasonal, b_seasonal, w_trend, b_trend)
    assert y.shape == (1, 1, output_size), y.shape
    assert jnp.allclose(y, y_ref, atol=1e-4, rtol=1e-4), "mismatch vs reference"

    print("KERNEL_OK")
</pallas_src>

<mosaic_0001>
module attributes {stable_mosaic.version = 11 : i64} {
  func.func @_dlinear_kernel(%arg0: memref<1x128xf32, #tpu.memory_space<vmem>>, %arg1: memref<128x128xf32, #tpu.memory_space<vmem>>, %arg2: memref<32x128xf32, #tpu.memory_space<vmem>>, %arg3: memref<32x128xf32, #tpu.memory_space<vmem>>, %arg4: memref<1x32xf32, #tpu.memory_space<vmem>>, %arg5: memref<1x32xf32, #tpu.memory_space<vmem>>, %arg6: memref<1x32xf32, #tpu.memory_space<vmem>>) attributes {dimension_semantics = [], scalar_prefetch = 0 : i64, scratch_operands = 0 : i64, tpu.core_type = #tpu.core_type<tc>} {
    %c0 = arith.constant 0 : index
    %c0_0 = arith.constant 0 : index
    %0 = vector.load %arg0[%c0, %c0_0] : memref<1x128xf32, #tpu.memory_space<vmem>>, vector<1x128xf32>
    %c0_1 = arith.constant 0 : index
    %c0_2 = arith.constant 0 : index
    %1 = vector.load %arg1[%c0_1, %c0_2] : memref<128x128xf32, #tpu.memory_space<vmem>>, vector<128x128xf32>
    %cst = arith.constant dense<0.000000e+00> : vector<1x128xf32>
    %2 = tpu.matmul %0, %1, %cst {dimension_numbers = #tpu.dot_dimension_numbers<[1], [1], [0], [0], [0, 0, 1, 0], [], []>, precision = #tpu.contract_precision<fp32>} : vector<1x128xf32>, vector<128x128xf32>, vector<1x128xf32> -> vector<1x128xf32>
    %3 = arith.subf %0, %2 : vector<1x128xf32>
    %c0_3 = arith.constant 0 : index
    %c0_4 = arith.constant 0 : index
    %4 = vector.load %arg2[%c0_3, %c0_4] : memref<32x128xf32, #tpu.memory_space<vmem>>, vector<32x128xf32>
    %cst_5 = arith.constant dense<0.000000e+00> : vector<1x32xf32>
    %5 = tpu.matmul %3, %4, %cst_5 {dimension_numbers = #tpu.dot_dimension_numbers<[1], [1], [0], [0], [0, 0, 1, 0], [], []>, precision = #tpu.contract_precision<fp32>} : vector<1x128xf32>, vector<32x128xf32>, vector<1x32xf32> -> vector<1x32xf32>
    %c0_6 = arith.constant 0 : index
    %c0_7 = arith.constant 0 : index
    %6 = vector.load %arg3[%c0_6, %c0_7] : memref<32x128xf32, #tpu.memory_space<vmem>>, vector<32x128xf32>
    %cst_8 = arith.constant dense<0.000000e+00> : vector<1x32xf32>
    %7 = tpu.matmul %2, %6, %cst_8 {dimension_numbers = #tpu.dot_dimension_numbers<[1], [1], [0], [0], [0, 0, 1, 0], [], []>, precision = #tpu.contract_precision<fp32>} : vector<1x128xf32>, vector<32x128xf32>, vector<1x32xf32> -> vector<1x32xf32>
    %8 = arith.addf %5, %7 : vector<1x32xf32>
    %c0_9 = arith.constant 0 : index
    %c0_10 = arith.constant 0 : index
    %9 = vector.load %arg4[%c0_9, %c0_10] : memref<1x32xf32, #tpu.memory_space<vmem>>, vector<1x32xf32>
    %10 = arith.addf %8, %9 : vector<1x32xf32>
    %c0_11 = arith.constant 0 : index
    %c0_12 = arith.constant 0 : index
    %11 = vector.load %arg5[%c0_11, %c0_12] : memref<1x32xf32, #tpu.memory_space<vmem>>, vector<1x32xf32>
    %12 = arith.addf %10, %11 : vector<1x32xf32>
    %c0_13 = arith.constant 0 : index
    %c0_14 = arith.constant 0 : index
    %13 = vector.load %arg6[%c0_13, %c0_14] : memref<1x32xf32, #tpu.memory_space<vmem>>, vector<1x32xf32>
    tpu.vector_store %arg6[%c0_13, %c0_14], %12 {strides = array<i32>} : memref<1x32xf32, #tpu.memory_space<vmem>>, vector<1x32xf32>,
    return
  }
}

</mosaic_0001>

<bundles_post_ra>
// kernel: tpu_custom_call.1
= control target key start
LH: loop header
LB: loop body
LE: loop exit
PB: predicated region body
PF: predicated region fallthrough
CT: control target
= control target key end

     0   :  { %11 = vsyncpa [#allocation3], 0  ;;  %s1394_s0 = inlined_call_operand.hbm [shape: f32[1,128], index: 0, kind: input, shape index: {}]   ;;  %s1395_s1 = inlined_call_operand.hbm [shape: f32[128,128], index: 1, kind: input, shape index: {}]   ;;  %s1396_s2 = inlined_call_operand.hbm [shape: f32[32,128], index: 2, kind: input, shape index: {}]   ;;  %s1397_s3 = inlined_call_operand.hbm [shape: f32[32,128], index: 3, kind: input, shape index: {}]   ;;  %s1398_s4 = inlined_call_operand.vmem [shape: f32[1,32], index: 4, kind: input, shape index: {}]   ;;  %s1399_s5 = inlined_call_operand.vmem [shape: f32[1,32], index: 5, kind: input, shape index: {}]   ;;  %s1400_s6 = inlined_call_operand.hbm [shape: f32[1,32], index: 6, kind: output, shape index: {}]  }
   0x1   :  { %12 = vsyncpa [#allocation6], 0 }
   0x2   :  { %13 = vsyncpa [#allocation9], 0  ;;  %s30_s23 = sshll.u32 %s1395_s1, 4  ;;  %s31_s23 = int_to_ptr.hbm [resolvable:$true] %s30_s23 }
   0x3   :  { %14 = vsyncpa [#allocation4], 0  ;;  %s982_s24 = smov [#allocation5]   ;;  %s20_s28 = sshll.u32 %s1394_s0, 4  ;;  %s21_s28 = int_to_ptr.hbm [resolvable:$true] %s20_s28 }
   0x4   :  { %s32_s25 = sshll.u32 %s982_s24, 4  ;;  %s983_s29 = smov 128   ;;  %s33_s25 = int_to_ptr.vmem [resolvable:$true] %s32_s25 }
   0x5   :  { %s984_s30 = smov 8   ;;  %s985_s7 = smov [#allocation2]  }
   0x6   :  { %38 = dma.hbm_to_vmem [thread:$0]  %s31_s23, 2048, %s33_s25, [#allocation6], %s983_s29, %s983_s29, %s984_s30  }
   0x7   :  { %s22_s8 = sshll.u32 %s985_s7, 4  ;;  %s43_s11 = sshll.u32 %s1396_s2, 4  ;;  %s23_s8 = int_to_ptr.vmem [resolvable:$true] %s22_s8  ;;  %s44_s11 = int_to_ptr.hbm [resolvable:$true] %s43_s11 }
   0x8   :  { %25 = dma.hbm_to_vmem [thread:$0]  %s21_s28, 16, %s23_s8, [#allocation3]  }
   0x9   :  { %s56_s13 = sshll.u32 %s1397_s3, 4  ;;  %s986_s14 = smov [#allocation7]   ;;  %s57_s13 = int_to_ptr.hbm [resolvable:$true] %s56_s13 }
   0xa   :  { %s45_s15 = sshll.u32 %s986_s14, 4  ;;  %s987_s0 = smov [#allocation8]   ;;  %s46_s15 = int_to_ptr.vmem [resolvable:$true] %s45_s15 }
   0xb   :  { %51 = dma.hbm_to_vmem [thread:$0]  %s44_s11, 512, %s46_s15, [#allocation6], %s983_s29, %s983_s29, %s984_s30  }
   0xc   :  { %s58_s16 = sshll.u32 %s987_s0, 4  ;;  %s59_s16 = int_to_ptr.vmem [resolvable:$true] %s58_s16 }
   0xd   :  { %64 = dma.hbm_to_vmem [thread:$0]  %s57_s13, 512, %s59_s16, [#allocation9], %s983_s29, %s983_s29, %s984_s30  }
   0xe   :  { %974 = dma.done.wait [#allocation3], 16  }
   0xf   :  { %975 = vsyncadd [#allocation3], 4294967280 }
  0x10   :  { %976 = dma.done.wait [#allocation6], 2560  }
  0x11   :  { %977 = vsyncadd [#allocation6], 4294964736 }
  0x12   :  { %978 = dma.done.wait [#allocation9], 512  }
  0x13   :  { %979 = vsyncadd [#allocation9], 4294966784  ;;  %v101_v0 = vld [vmem:[#allocation5 + $0x78] sm:$0xff]  ;;  %v100_v1 = vld [vmem:[#allocation5 + $0x70] sm:$0xff]  ;;  %s988_s19 = smov [#allocation10]   ;;  %s835_s23 = sshll.u32 %s1400_s6, 4  ;;  %s836_s23 = int_to_ptr.hbm [resolvable:$true] %s835_s23 }
  0x14   :  { %v99_v2 = vld [vmem:[#allocation5 + $0x68] sm:$0xff]  ;;  %v1036_v3 = vand.u32 4294901760, %v101_v0  ;;  %v1038_v4 = vand.u32 4294901760, %v100_v1  ;;  %v98_v6 = vld [vmem:[#allocation5 + $0x60] sm:$0xff]  ;;  %v97_v11 = vld [vmem:[#allocation5 + $0x58] sm:$0xff]  ;;  %s833_s20 = sshll.u32 %s988_s19, 4  ;;  %s834_s20 = int_to_ptr.vmem [resolvable:$true] %s833_s20 }
  0x15   :  { %v1040_v5 = vand.u32 4294901760, %v99_v2  ;;  %v1049_v9 = vand.u32 4294901760, %v98_v6  ;;  %v1058_v14 = vand.u32 4294901760, %v97_v11  ;;  %v96_v19 = vld [vmem:[#allocation5 + $0x50] sm:$0xff]  ;;  %v95_v26 = vld [vmem:[#allocation5 + $0x48] sm:$0xff]  ;;  %v94_v32 = vld [vmem:[#allocation5 + $0x40] sm:$0xff] }
  0x16   :  { %103 = vmatpush.xpose.msra.mxu0 %v1036_v3  ;;  %v1044_v7 = vsub.f32 %v101_v0, %v1036_v3  ;;  %v1047_v8 = vsub.f32 %v100_v1, %v1038_v4  ;;  %299 = vmatpush.xpose.msra.mxu3 %v1036_v3  ;;  %v1073_v21 = vand.u32 4294901760, %v96_v19  ;;  %v1085_v27 = vand.u32 4294901760, %v95_v26  ;;  %v93_v38 = vld [vmem:[#allocation5 + $0x38] sm:$0xff]  ;;  %v92_v44 = vld [vmem:[#allocation5 + $0x30] sm:$0xff]  ;;  %v91_v50 = vld [vmem:[#allocation5 + $0x28] sm:$0xff] }
  0x17   :  { %v1052_v10 = vsub.f32 %v99_v2, %v1040_v5  ;;  %v1069_v18 = vsub.f32 %v98_v6, %v1049_v9  ;;  %v1081_v25 = vsub.f32 %v97_v11, %v1058_v14  ;;  %v1105_v37 = vand.u32 4294901760, %v94_v32  ;;  %v90_v56 = vld [vmem:[#allocation5 + $0x20] sm:$0xff]  ;;  %v89_v62 = vld [vmem:[#allocation5 + $0x18] sm:$0xff]  ;;  %v88_v11 = vld [vmem:[#allocation5 + $0x10] sm:$0xff] }
  0x18   :  { %v145_v12 = vand.u32 4294901760, %v1044_v7  ;;  %v151_v13 = vand.u32 4294901760, %v1047_v8  ;;  %246 = vmatpush.xpose.msra.mxu2 %v1044_v7  ;;  %v1093_v31 = vsub.f32 %v96_v19, %v1073_v21  ;;  %v1098_v33 = vsub.f32 %v95_v26, %v1085_v27 }
  0x19   :  { %v157_v17 = vand.u32 4294901760, %v1052_v10  ;;  %v163_v24 = vand.u32 4294901760, %v1069_v18  ;;  %v169_v30 = vand.u32 4294901760, %v1081_v25  ;;  %v1114_v42 = vand.u32 4294901760, %v93_v38 }
  0x1a   :  { %105 = vmatpush.xpose.msra.mxu0 %v1038_v4  ;;  %v146_v15 = vsub.f32 %v1044_v7, %v145_v12  ;;  %v152_v16 = vsub.f32 %v1047_v8, %v151_v13  ;;  %301 = vmatpush.xpose.msra.mxu3 %v1038_v4  ;;  %v175_v36 = vand.u32 4294901760, %v1093_v31  ;;  %v181_v39 = vand.u32 4294901760, %v1098_v33  ;;  %v1241_v7 = vld [vmem:[#allocation2] sm:$0x1] }
  0x1b   :  { %v158_v23 = vsub.f32 %v1052_v10, %v157_v17  ;;  %v164_v29 = vsub.f32 %v1069_v18, %v163_v24  ;;  %v170_v35 = vsub.f32 %v1081_v25, %v169_v30  ;;  %v1117_v43 = vsub.f32 %v94_v32, %v1105_v37 }
  0x1c   :  { %v147_v20 = vand.u32 4294901760, %v146_v15  ;;  %249 = vmatpush.xpose.msra.mxu2 %v1047_v8  ;;  %v153_v22 = vand.u32 4294901760, %v152_v16  ;;  %v176_v41 = vsub.f32 %v1093_v31, %v175_v36  ;;  %v182_v45 = vsub.f32 %v1098_v33, %v181_v39 }
  0x1d   :  { %v159_v28 = vand.u32 4294901760, %v158_v23  ;;  %v165_v34 = vand.u32 4294901760, %v164_v29  ;;  %v171_v40 = vand.u32 4294901760, %v170_v35  ;;  %v187_v47 = vand.u32 4294901760, %v1117_v43  ;;  %v87_v23 = vld [vmem:[#allocation5 + $0x8] sm:$0xff]  ;;  %v86_v35 = vld [vmem:[#allocation5] sm:$0xff] }
  0x1e   :  { %148 = vmatpush.xpose.msra.mxu1 %v147_v20  ;;  %107 = vmatpush.xpose.msra.mxu0 %v1040_v5  ;;  %v177_v46 = vand.u32 4294901760, %v176_v41  ;;  %v1126_v48 = vand.u32 4294901760, %v92_v44  ;;  %v1129_v49 = vsub.f32 %v93_v38, %v1114_v42  ;;  %v183_v51 = vand.u32 4294901760, %v182_v45 }
  0x1f   :  { %303 = vmatpush.xpose.msra.mxu3 %v1040_v5  ;;  %v188_v52 = vsub.f32 %v1117_v43, %v187_v47  ;;  %v1138_v54 = vand.u32 4294901760, %v91_v50  ;;  %v1145_v57 = vand.u32 4294901760, %v90_v56  ;;  %v1165_v6 = vand.u32 4294901760, %v89_v62 }
  0x20   :  { %252 = vmatpush.xpose.msra.mxu2 %v1052_v10  ;;  %v193_v53 = vand.u32 4294901760, %v1129_v49  ;;  %v1141_v55 = vsub.f32 %v92_v44, %v1126_v48  ;;  %v1174_v20 = vand.u32 4294901760, %v88_v11  ;;  %v1186_v32 = vand.u32 4294901760, %v87_v23  ;;  %v450_v10 = vld [vmem:[#allocation8 + $0x10] sm:$0xff] }
  0x21   :  { %v189_v58 = vand.u32 4294901760, %v188_v52  ;;  %v1153_v61 = vsub.f32 %v91_v50, %v1138_v54  ;;  %v1158_v63 = vsub.f32 %v90_v56, %v1145_v57  ;;  %v1198_v44 = vand.u32 4294901760, %v86_v35 }
  0x22   :  { %154 = vmatpush.xpose.msra.mxu1 %v153_v22  ;;  %109 = vmatpush.xpose.msra.mxu0 %v1049_v9  ;;  %v194_v59 = vsub.f32 %v1129_v49, %v193_v53  ;;  %v199_v60 = vand.u32 4294901760, %v1141_v55  ;;  %v1177_v22 = vsub.f32 %v89_v62, %v1165_v6  ;;  %v1201_v45 = vsub.f32 %v87_v23, %v1186_v32 }
  0x23   :  { %305 = vmatpush.xpose.msra.mxu3 %v1049_v9  ;;  %v205_v2 = vand.u32 4294901760, %v1153_v61  ;;  %v211_v15 = vand.u32 4294901760, %v1158_v63  ;;  %v1211_v52 = vsub.f32 %v86_v35, %v1198_v44  ;;  %v134_v8 = vand.u32 4294901760, %v1241_v7 }
  0x24   :  { %255 = vmatpush.xpose.msra.mxu2 %v1069_v18  ;;  %v195_v0 = vand.u32 4294901760, %v194_v59  ;;  %v200_v1 = vsub.f32 %v1141_v55, %v199_v60  ;;  %v217_v29 = vand.u32 4294901760, %v1177_v22  ;;  %vm826_vm0 = vcmask 253952  }
  0x25   :  { %v206_v19 = vsub.f32 %v1153_v61, %v205_v2  ;;  %v212_v26 = vsub.f32 %v1158_v63, %v211_v15  ;;  %v235_v59 = vand.u32 4294901760, %v1211_v52 }
  0x26   :  { %160 = vmatpush.xpose.msra.mxu1 %v159_v28  ;;  %111 = vmatpush.xpose.msra.mxu0 %v1058_v14  ;;  %v201_v16 = vand.u32 4294901760, %v200_v1 }
  0x27   :  { %307 = vmatpush.xpose.msra.mxu3 %v1058_v14  ;;  %v207_v28 = vand.u32 4294901760, %v206_v19  ;;  %v213_v38 = vand.u32 4294901760, %v212_v26  ;;  %v444_v19 = vld [vmem:[#allocation7] sm:$0xff] }
  0x28   :  { %258 = vmatpush.xpose.msra.mxu2 %v1081_v25 }
  0x2a   :  { %166 = vmatpush.xpose.msra.mxu1 %v165_v34  ;;  %113 = vmatpush.xpose.msra.mxu0 %v1073_v21  ;;  %v1189_v34 = vsub.f32 %v88_v11, %v1174_v20  ;;  %v445_v11 = vld [vmem:[#allocation7 + $0x8] sm:$0xff] }
  0x2b   :  { %309 = vmatpush.xpose.msra.mxu3 %v1073_v21 }
  0x2c   :  { %261 = vmatpush.xpose.msra.mxu2 %v1093_v31  ;;  %v223_v41 = vand.u32 4294901760, %v1189_v34 }
  0x2e   :  { %172 = vmatpush.xpose.msra.mxu1 %v171_v40  ;;  %115 = vmatpush.xpose.msra.mxu0 %v1085_v27  ;;  %v218_v40 = vsub.f32 %v1177_v22, %v217_v29  ;;  %v224_v50 = vsub.f32 %v1189_v34, %v223_v41 }
  0x2f   :  { %311 = vmatpush.xpose.msra.mxu3 %v1085_v27 }
  0x30   :  { %264 = vmatpush.xpose.msra.mxu2 %v1098_v33  ;;  %v225_v56 = vand.u32 4294901760, %v224_v50 }
  0x32   :  { %178 = vmatpush.xpose.msra.mxu1 %v177_v46  ;;  %117 = vmatpush.xpose.msra.mxu0 %v1105_v37  ;;  %v219_v46 = vand.u32 4294901760, %v218_v40 }
  0x33   :  { %313 = vmatpush.xpose.msra.mxu3 %v1105_v37 }
  0x34   :  { %267 = vmatpush.xpose.msra.mxu2 %v1117_v43 }
  0x36   :  { %184 = vmatpush.xpose.msra.mxu1 %v183_v51  ;;  %119 = vmatpush.xpose.msra.mxu0 %v1114_v42  ;;  %v229_v51 = vand.u32 4294901760, %v1201_v45 }
  0x37   :  { %315 = vmatpush.xpose.msra.mxu3 %v1114_v42 }
  0x38   :  { %270 = vmatpush.xpose.msra.mxu2 %v1129_v49 }
  0x3a   :  { %190 = vmatpush.xpose.msra.mxu1 %v189_v58  ;;  %121 = vmatpush.xpose.msra.mxu0 %v1126_v48  ;;  %v230_v58 = vsub.f32 %v1201_v45, %v229_v51 }
  0x3b   :  { %317 = vmatpush.xpose.msra.mxu3 %v1126_v48 }
  0x3c   :  { %273 = vmatpush.xpose.msra.mxu2 %v1141_v55  ;;  %v231_v62 = vand.u32 4294901760, %v230_v58 }
  0x3e   :  { %196 = vmatpush.xpose.msra.mxu1 %v195_v0  ;;  %123 = vmatpush.xpose.msra.mxu0 %v1138_v54  ;;  %v236_v0 = vsub.f32 %v1211_v52, %v235_v59 }
  0x3f   :  { %319 = vmatpush.xpose.msra.mxu3 %v1138_v54 }
  0x40   :  { %276 = vmatpush.xpose.msra.mxu2 %v1153_v61  ;;  %v237_v1 = vand.u32 4294901760, %v236_v0 }
  0x42   :  { %202 = vmatpush.xpose.msra.mxu1 %v201_v16  ;;  %125 = vmatpush.xpose.msra.mxu0 %v1145_v57 }
  0x43   :  { %321 = vmatpush.xpose.msra.mxu3 %v1145_v57 }
  0x44   :  { %279 = vmatpush.xpose.msra.mxu2 %v1158_v63  ;;  %v446_v63 = vld [vmem:[#allocation7 + $0x10] sm:$0xff] }
  0x46   :  { %208 = vmatpush.xpose.msra.mxu1 %v207_v28  ;;  %127 = vmatpush.xpose.msra.mxu0 %v1165_v6 }
  0x47   :  { %323 = vmatpush.xpose.msra.mxu3 %v1165_v6 }
  0x48   :  { %282 = vmatpush.xpose.msra.mxu2 %v1177_v22 }
  0x4a   :  { %214 = vmatpush.xpose.msra.mxu1 %v213_v38  ;;  %129 = vmatpush.xpose.msra.mxu0 %v1174_v20 }
  0x4b   :  { %325 = vmatpush.xpose.msra.mxu3 %v1174_v20 }
  0x4c   :  { %285 = vmatpush.xpose.msra.mxu2 %v1189_v34 }
  0x4e   :  { %220 = vmatpush.xpose.msra.mxu1 %v219_v46  ;;  %131 = vmatpush.xpose.msra.mxu0 %v1186_v32 }
  0x4f   :  { %327 = vmatpush.xpose.msra.mxu3 %v1186_v32 }
  0x50   :  { %288 = vmatpush.xpose.msra.mxu2 %v1201_v45 }
  0x52   :  { %226 = vmatpush.xpose.msra.mxu1 %v225_v56  ;;  %133 = vmatpush.xpose.msra.mxu0 %v1198_v44 }
  0x53   :  { %329 = vmatpush.xpose.msra.mxu3 %v1198_v44 }
  0x54   :  { %291 = vmatpush.xpose.msra.mxu2 %v1211_v52 }
  0x56   :  { %340 = vmatpush.xpose.msrb.mxu0 %v145_v12  ;;  %232 = vmatpush.xpose.msra.mxu1 %v231_v62  ;;  %v135_v12 = vsub.f32 %v1241_v7, %v134_v8 }
  0x58   :  { %294 = vmatmul.f32.vlgmr.msra.gmra.mxu2 %v135_v12 }
  0x5a   :  { %344 = vmatpush.xpose.msrb.mxu0 %v151_v13  ;;  %238 = vmatpush.xpose.msra.mxu1 %v237_v1  ;;  %v449_v13 = vld [vmem:[#allocation8 + $0x8] sm:$0xff] }
  0x5b   :  { %v1267_v18 = vand.u32 4294901760, %v449_v13 }
  0x5d   :  { %240 = vmatmul.f32.vlgmr.msra.gmra.mxu1 %v134_v8  ;;  %v1277_v25 = vsub.f32 %v449_v13, %v1267_v18 }
  0x5e   :  { %407 = vmatpush.xpose.msrb.mxu1 %v1036_v3  ;;  %348 = vmatpush.xpose.msrb.mxu0 %v157_v17  ;;  %v136_v3 = vand.u32 4294901760, %v135_v12  ;;  %v1265_v17 = vand.u32 4294901760, %v450_v10 }
  0x60   :  { %333 = vmatmul.f32.vlgmr.msra.gmra.mxu3 %v136_v3 }
  0x62   :  { %409 = vmatpush.xpose.msrb.mxu1 %v1038_v4  ;;  %352 = vmatpush.xpose.msrb.mxu0 %v163_v24  ;;  %v137_v4 = vsub.f32 %v135_v12, %v136_v3  ;;  %v1273_v24 = vsub.f32 %v450_v10, %v1265_v17 }
  0x66   :  { %411 = vmatpush.xpose.msrb.mxu1 %v1040_v5  ;;  %356 = vmatpush.xpose.msrb.mxu0 %v169_v30  ;;  %v138_v5 = vand.u32 4294901760, %v137_v4  ;;  %v501_v30 = vand.u32 4294901760, %v1273_v24 }
  0x68   :  { %139 = vmatmul.f32.vlgmr.msra.gmra.mxu0 %v138_v5  ;;  %v502_v33 = vsub.f32 %v1273_v24, %v501_v30 }
  0x6a   :  { %413 = vmatpush.xpose.msrb.mxu1 %v1049_v9  ;;  %360 = vmatpush.xpose.msrb.mxu0 %v175_v36  ;;  %v451_v9 = vld [vmem:[#allocation8 + $0x18] sm:$0xff]  ;;  %v507_v36 = vand.u32 4294901760, %v1277_v25 }
  0x6e   :  { %415 = vmatpush.xpose.msrb.mxu1 %v1058_v14  ;;  %364 = vmatpush.xpose.msrb.mxu0 %v181_v39  ;;  %v1263_v14 = vand.u32 4294901760, %v451_v9  ;;  %v503_v39 = vand.u32 4294901760, %v502_v33 }
  0x70   :  { %465 = vmatpush.xpose.msrb.mxu2 %v1263_v14 }
  0x72   :  { %417 = vmatpush.xpose.msrb.mxu1 %v1073_v21  ;;  %368 = vmatpush.xpose.msrb.mxu0 %v187_v47  ;;  %v1270_v21 = vsub.f32 %v451_v9, %v1263_v14  ;;  %v448_v47 = vld [vmem:[#allocation8] sm:$0xff] }
  0x74   :  { %467 = vmatpush.xpose.msrb.mxu2 %v1265_v17 }
  0x76   :  { %419 = vmatpush.xpose.msrb.mxu1 %v1085_v27  ;;  %372 = vmatpush.xpose.msrb.mxu0 %v193_v53  ;;  %v495_v27 = vand.u32 4294901760, %v1270_v21  ;;  %v447_v53 = vld [vmem:[#allocation7 + $0x18] sm:$0xff] }
  0x77   :  { %v1318_v55 = vand.u32 4294901760, %v447_v53 }
  0x78   :  { %v496_v31 = vsub.f32 %v1270_v21, %v495_v27  ;;  %469 = vmatpush.xpose.msrb.mxu2 %v1267_v18 }
  0x7a   :  { %421 = vmatpush.xpose.msrb.mxu1 %v1105_v37  ;;  %376 = vmatpush.xpose.msrb.mxu0 %v199_v60  ;;  %v497_v37 = vand.u32 4294901760, %v496_v31  ;;  %v1324_v60 = vsub.f32 %v447_v53, %v1318_v55 }
  0x7c   :  { %498 = vmatpush.xpose.msrb.mxu3 %v497_v37  ;;  %v680_v58 = vand.u32 4294901760, %v1324_v60 }
  0x7e   :  { %423 = vmatpush.xpose.msrb.mxu1 %v1114_v42  ;;  %380 = vmatpush.xpose.msrb.mxu0 %v205_v2  ;;  %v508_v42 = vsub.f32 %v1277_v25, %v507_v36  ;;  %v1335_v2 = vand.u32 4294901760, %v446_v63  ;;  %v681_v1 = vsub.f32 %v1324_v60, %v680_v58 }
  0x80   :  { %504 = vmatpush.xpose.msrb.mxu3 %v503_v39  ;;  %v509_v43 = vand.u32 4294901760, %v508_v42 }
  0x82   :  { %425 = vmatpush.xpose.msrb.mxu1 %v1126_v48  ;;  %384 = vmatpush.xpose.msrb.mxu0 %v211_v15  ;;  %v1310_v48 = vand.u32 4294901760, %v448_v47  ;;  %v1342_v15 = vand.u32 4294901760, %v445_v11 }
  0x84   :  { %510 = vmatpush.xpose.msrb.mxu3 %v509_v43  ;;  %v1313_v49 = vsub.f32 %v448_v47, %v1310_v48  ;;  %471 = vmatpush.xpose.msrb.mxu2 %v1310_v48  ;;  %v1345_v16 = vsub.f32 %v445_v11, %v1342_v15  ;;  %v824_v11 = vld [vmem:[%s1399_s5] sm:$0x1] }
  0x86   :  { %427 = vmatpush.xpose.msrb.mxu1 %v1138_v54  ;;  %388 = vmatpush.xpose.msrb.mxu0 %v217_v29  ;;  %v513_v54 = vand.u32 4294901760, %v1313_v49  ;;  %v692_v3 = vand.u32 4294901760, %v1345_v16 }
  0x88   :  { %536 = vmatpush.xpose.msra.mxu2 %v1270_v21  ;;  %v693_v5 = vsub.f32 %v1345_v16, %v692_v3 }
  0x8a   :  { %429 = vmatpush.xpose.msrb.mxu1 %v1145_v57  ;;  %392 = vmatpush.xpose.msrb.mxu0 %v223_v41  ;;  %v514_v57 = vsub.f32 %v1313_v49, %v513_v54  ;;  %v694_v10 = vand.u32 4294901760, %v693_v5 }
  0x8c   :  { %539 = vmatpush.xpose.msra.mxu2 %v1273_v24  ;;  %v515_v61 = vand.u32 4294901760, %v514_v57 }
  0x8e   :  { %431 = vmatpush.xpose.msrb.mxu1 %v1165_v6  ;;  %396 = vmatpush.xpose.msrb.mxu0 %v229_v51  ;;  %v1338_v6 = vsub.f32 %v446_v63, %v1335_v2 }
  0x8f   :  { %516 = vmatpush.xpose.msrb.mxu3 %v515_v61 }
  0x90   :  { %542 = vmatpush.xpose.msra.mxu2 %v1277_v25 }
  0x92   :  { %433 = vmatpush.xpose.msrb.mxu1 %v1174_v20  ;;  %400 = vmatpush.xpose.msrb.mxu0 %v235_v59  ;;  %v1349_v20 = vand.u32 4294901760, %v444_v19 }
  0x93   :  { %565 = vmatpush.xpose.msra.mxu3 %v1263_v14 }
  0x94   :  { %545 = vmatpush.xpose.msra.mxu2 %v1313_v49  ;;  %v1352_v22 = vsub.f32 %v444_v19, %v1349_v20 }
  0x95   :  { %402 = vmatmul.f32.vlgmr.msrb.gmra.mxu0 %v134_v8 }
  0x96   :  { %435 = vmatpush.xpose.msrb.mxu1 %v1186_v32  ;;  %721 = vmatpush.xpose.msra.mxu0 %v1324_v60  ;;  %v698_v9 = vand.u32 4294901760, %v1352_v22 }
  0x97   :  { %567 = vmatpush.xpose.msra.mxu3 %v1265_v17 }
  0x98   :  { %v699_v13 = vsub.f32 %v1352_v22, %v698_v9 }
  0x9a   :  { %437 = vmatpush.xpose.msrb.mxu1 %v1198_v44  ;;  %724 = vmatpush.xpose.msra.mxu0 %v1338_v6 }
  0x9b   :  { %569 = vmatpush.xpose.msra.mxu3 %v1267_v18 }
  0x9d   :  { %439 = vmatmul.f32.vlgmr.msrb.gmra.mxu1 %v134_v8  ;;  %v682_v8 = vand.u32 4294901760, %v681_v1 }
  0x9e   :  { %750 = vmatpush.xpose.msra.mxu1 %v1318_v55  ;;  %727 = vmatpush.xpose.msra.mxu0 %v1345_v16 }
  0x9f   :  { %571 = vmatpush.xpose.msra.mxu3 %v1310_v48 }
  0xa2   :  { %752 = vmatpush.xpose.msra.mxu1 %v1335_v2  ;;  %730 = vmatpush.xpose.msra.mxu0 %v1352_v22 }
  0xa6   :  { %754 = vmatpush.xpose.msra.mxu1 %v1342_v15 }
  0xaa   :  { %756 = vmatpush.xpose.msra.mxu1 %v1349_v20 }
  0xda   :  { %v241_v23 = vpop.f32.mrf.mxu1 }
  0xdb   :  { %v295_v29 = vpop.f32.mrf.mxu2 }
  0xe3   :  { %v334_v34 = vpop.f32.mrf.mxu3 }
  0xe5   :  { %v140_v26 = vpop.f32.mrf.mxu0 }
  0xe6   :  { %v242_v28 = vadd.f32 %v241_v23, %v140_v26 }
  0xe8   :  { %v296_v32 = vadd.f32 %v295_v29, %v242_v28 }
  0xea   :  { %v335_v35 = vadd.f32 %v334_v34, %v296_v32 }
 0x112   :  { %v403_v38 = vpop.f32.mrf.mxu0 }
 0x113   :  { %v404_v40 = vadd.f32 %v403_v38, %v335_v35 }
 0x11a   :  { %v440_v41 = vpop.f32.mrf.mxu1 }
 0x11b   :  { %v441_v44 = vadd.f32 %v440_v41, %v404_v40 }
 0x11d   :  { %v443_v45 = vsub.f32 %v1241_v7, %v441_v44  ;;  %v472_v46 = vand.u32 4294901760, %v441_v44  ;;  %v686_v7 = vand.u32 4294901760, %v1338_v6 }
 0x11f   :  { %v473_v50 = vsub.f32 %v441_v44, %v472_v46  ;;  %v657_v51 = vand.u32 4294901760, %v443_v45  ;;  %518 = vmatmul.f32.vlgmr.msrb.gmra.mxu3 %v472_v46  ;;  %v687_v12 = vsub.f32 %v1338_v6, %v686_v7 }
 0x120   :  { %625 = vmatpush.xpose.msrb.mxu3 %v1263_v14  ;;  %v700_v14 = vand.u32 4294901760, %v699_v13 }
 0x121   :  { %v658_v52 = vsub.f32 %v443_v45, %v657_v51  ;;  %v474_v56 = vand.u32 4294901760, %v473_v50  ;;  %v688_v4 = vand.u32 4294901760, %v687_v12 }
 0x123   :  { %733 = vmatmul.f32.vlgmr.msra.gmra.mxu0 %v658_v52  ;;  %v659_v59 = vand.u32 4294901760, %v658_v52  ;;  %v475_v62 = vsub.f32 %v473_v50, %v474_v56 }
 0x124   :  { %627 = vmatpush.xpose.msrb.mxu3 %v1265_v17 }
 0x125   :  { %760 = vmatmul.f32.vlgmr.msra.gmra.mxu1 %v659_v59  ;;  %v476_v0 = vand.u32 4294901760, %v475_v62  ;;  %v660_v17 = vsub.f32 %v658_v52, %v659_v59 }
 0x127   :  { %477 = vmatmul.f32.vlgmr.msrb.gmra.mxu2 %v476_v0  ;;  %575 = vmatmul.f32.vlgmr.msra.gmra.mxu3 %v474_v56 }
 0x128   :  { %594 = vmatpush.xpose.msrb.mxu2 %v495_v27  ;;  %629 = vmatpush.xpose.msrb.mxu3 %v1267_v18  ;;  %v661_v18 = vand.u32 4294901760, %v660_v17 }
 0x12c   :  { %598 = vmatpush.xpose.msrb.mxu2 %v501_v30  ;;  %631 = vmatpush.xpose.msrb.mxu3 %v1310_v48 }
 0x12f   :  { %548 = vmatmul.f32.vlgmr.msra.gmra.mxu2 %v473_v50  ;;  %633 = vmatmul.f32.vlgmr.msrb.gmra.mxu3 %v472_v46 }
 0x130   :  { %683 = vmatpush.xpose.msra.mxu3 %v682_v8  ;;  %602 = vmatpush.xpose.msrb.mxu2 %v507_v36 }
 0x134   :  { %689 = vmatpush.xpose.msra.mxu3 %v688_v4  ;;  %606 = vmatpush.xpose.msrb.mxu2 %v513_v54 }
 0x137   :  { %608 = vmatmul.f32.vlgmr.msrb.gmra.mxu2 %v472_v46 }
 0x138   :  { %650 = vmatpush.xpose.msra.mxu2 %v1318_v55  ;;  %695 = vmatpush.xpose.msra.mxu3 %v694_v10 }
 0x13c   :  { %652 = vmatpush.xpose.msra.mxu2 %v1335_v2  ;;  %701 = vmatpush.xpose.msra.mxu3 %v700_v14 }
 0x13f   :  { %703 = vmatmul.f32.vlgmr.msra.gmra.mxu3 %v657_v51 }
 0x140   :  { %810 = vmatpush.xpose.msrb.mxu3 %v1318_v55  ;;  %654 = vmatpush.xpose.msra.mxu2 %v1342_v15 }
 0x144   :  { %812 = vmatpush.xpose.msrb.mxu3 %v1335_v2  ;;  %656 = vmatpush.xpose.msra.mxu2 %v1349_v20  ;;  %v822_v2 = vld [vmem:[%s1398_s4] sm:$0x1] }
 0x147   :  { %662 = vmatmul.f32.vlgmr.msra.gmra.mxu2 %v661_v18 }
 0x148   :  { %779 = vmatpush.xpose.msrb.mxu2 %v680_v58  ;;  %814 = vmatpush.xpose.msrb.mxu3 %v1342_v15 }
 0x14c   :  { %783 = vmatpush.xpose.msrb.mxu2 %v686_v7  ;;  %816 = vmatpush.xpose.msrb.mxu3 %v1349_v20 }
 0x14f   :  { %818 = vmatmul.f32.vlgmr.msrb.gmra.mxu3 %v657_v51 }
 0x150   :  { %787 = vmatpush.xpose.msrb.mxu2 %v692_v3 }
 0x154   :  { %791 = vmatpush.xpose.msrb.mxu2 %v698_v9 }
 0x157   :  { %793 = vmatmul.f32.vlgmr.msrb.gmra.mxu2 %v657_v51 }
 0x1a0   :  { %v734_v53 = vpop.f32.mrf.mxu0 }
 0x1a2   :  { %v519_v24 = vpop.f32.mrf.mxu3  ;;  %v761_v55 = vpop.f32.mrf.mxu1 }
 0x1aa   :  { %v478_v21 = vpop.f32.mrf.mxu2  ;;  %v576_v27 = vpop.f32.mrf.mxu3 }
 0x1ab   :  { %v520_v30 = vadd.f32 %v519_v24, %v478_v21 }
 0x1b2   :  { %v549_v25 = vpop.f32.mrf.mxu2  ;;  %v634_v37 = vpop.f32.mrf.mxu3 }
 0x1b3   :  { %v550_v31 = vadd.f32 %v549_v25, %v520_v30 }
 0x1b5   :  { %v577_v36 = vadd.f32 %v576_v27, %v550_v31 }
 0x1ba   :  { %v609_v33 = vpop.f32.mrf.mxu2 }
 0x1bb   :  { %v610_v39 = vadd.f32 %v609_v33, %v577_v36 }
 0x1bd   :  { %v635_v42 = vadd.f32 %v634_v37, %v610_v39 }
 0x1c2   :  { %v704_v48 = vpop.f32.mrf.mxu3 }
 0x1ca   :  { %v663_v43 = vpop.f32.mrf.mxu2 }
 0x1cb   :  { %v664_v47 = vadd.f32 %v663_v43, %v635_v42 }
 0x1cd   :  { %v705_v49 = vadd.f32 %v704_v48, %v664_v47 }
 0x1cf   :  { %v735_v54 = vadd.f32 %v734_v53, %v705_v49 }
 0x1d1   :  { %v762_v57 = vadd.f32 %v761_v55, %v735_v54 }
 0x1d2   :  { %v819_v63 = vpop.f32.mrf.mxu3 }
 0x1da   :  { %v794_v60 = vpop.f32.mrf.mxu2 }
 0x1db   :  { %v795_v61 = vadd.f32 %v794_v60, %v762_v57 }
 0x1dd   :  { %v820_v6 = vadd.f32 %v819_v63, %v795_v61 }
 0x1df   :  { %v823_v15 = vadd.f32 %v822_v2, %v820_v6 }
 0x1e1   :  { %v825_v16 = vadd.f32 %v824_v11, %v823_v15 }
 0x1e3   :  { %827 = vst.msk [vmem:[#allocation10] sm:$0x1] %vm826_vm0, %v825_v16 }
 0x1e4   :  { %838 = dma.vmem_to_hbm [thread:$0]  %s834_s20, 16, %s836_s23, [#allocation4]  }
 0x1e5   :  { %980 = dma.done.wait [#allocation4], 16  }
 0x1e6   :  { %981 = vsyncadd [#allocation4], 4294967280 }
 0x1e7   :  { %843 = vsyncpa [#allocation3], 1 }
 0x1e8   :  { %844 = vsyncpa [#allocation6], 1 }
 0x1e9   :  { %845 = vsyncpa [#allocation9], 1 }
 0x1ea   :  { %846 = vsyncpa [#allocation4], 1 }

</bundles_post_ra>
